<compile_context>
chip_gen: v7x
topology: tpu7x:2x2x1
jax: 0.10.0
libtpu: 0.0.40
codegen_flags: <defaults>
</compile_context>

<pallas_src>
import jax
import jax.numpy as jnp
from jax.experimental import pallas as pl
from jax.experimental.pallas import tpu as pltpu

LN_EPS = 1e-5  # torch.nn.LayerNorm default


def _round_up(x, m):
    return ((x + m - 1) // m) * m


def _vmem_budgets():
    """(per-buffer hidden-tile budget, vmem_limit_bytes), generation-aware."""
    try:
        cap = pltpu.get_tpu_info().vmem_capacity_bytes
    except Exception:  # pragma: no cover - fall back to the tightest (v7x) budget
        cap = 64 * 1024 * 1024
    if cap >= 96 * 1024 * 1024:
        # v5e / v6e class parts: 128 MiB VMEM -> big tiles, raised scoped limit.
        return 28 * 1024 * 1024, 100 * 1024 * 1024
    # v7x class parts: 64 MiB VMEM -> keep 2x h + mask + weights + scratch < 48 MiB.
    return 14 * 1024 * 1024, 48 * 1024 * 1024


def _choose_tiles(btot, seq, hidden, per_buffer_budget, dtype_bytes=2):
    """Pick (batch_tile, seq_tile) so a double-buffered bf16 hidden tile fits
    the per-generation VMEM budget while keeping (8,128) layout legality and
    leaving >= 2 batch tiles for megacore sharding when the batch allows it."""
    bp0 = _round_up(btot, 8)
    tb = min(128, bp0)
    # Guarantee at least two batch tiles when bp >= 16 so the "parallel" batch
    # axis can actually shard across v7x's two TensorCores.
    if bp0 >= 16:
        tb = min(tb, _round_up(bp0 // 2, 8))

    # Sequence tile: full sequence when short, otherwise the {128,256} choice
    # that minimizes streamed zero-padding (ties -> larger tile, fewer steps).
    if seq <= 256:
        ts = seq
    else:
        ts = min((128, 256), key=lambda t: (_round_up(seq, t), -t))

    def fits(tb_, ts_):
        return tb_ * ts_ * hidden * dtype_bytes <= per_buffer_budget

    while not fits(tb, ts):
        if ts > 128:
            ts = 128
        elif tb > 8:
            tb = max(8, tb // 2)
        else:
            break
    return tb, ts


def _layernorm(x, gamma, beta):
    # PyTorch LayerNorm: biased variance over the last dim, f32 math.
    mean = jnp.mean(x, axis=-1, keepdims=True)
    var = jnp.mean((x - mean) ** 2, axis=-1, keepdims=True)
    inv = jax.lax.rsqrt(var + LN_EPS)
    return (x - mean) * inv * gamma + beta


def _projection_kernel(h_ref, m_ref,
                       w1_ref, b1_ref, g1_ref, be1_ref,
                       w2_ref, b2_ref, g2_ref, be2_ref,
                       w3_ref, b3_ref,
                       out_ref, acc_ref, len_ref):
    s = pl.program_id(1)

    @pl.when(s == 0)
    def _():
        acc_ref[...] = jnp.zeros_like(acc_ref)
        len_ref[...] = jnp.zeros_like(len_ref)

    # Masked-sum accumulation for this (batch_tile, seq_tile) block.
    # bf16 mask multiply (exact for 0/1), f32 accumulation; mask comes in as
    # [TB, TS, 1] so the broadcast is a pure lane broadcast (no XLU relayout).
    h = h_ref[...]                                            # [TB, TS, H] bf16
    m = m_ref[...]                                            # [TB, TS, 1] bf16
    acc_ref[...] += jnp.sum((h * m).astype(jnp.float32), axis=1)
    len_ref[...] += jnp.sum(m.astype(jnp.float32), axis=1)    # [TB, 1]

    @pl.when(s == pl.num_programs(1) - 1)
    def _():
        # mean_pooling: sum(tok_emb * mask) / clamp(sum(mask), min=1e-9)
        # Exact divide (matches torch); runs once per batch tile.
        den = jnp.maximum(len_ref[...], 1e-9)                 # [TB, 1]
        pooled = acc_ref[...] / den                           # [TB, H] f32

        # Linear(H -> 512) + LayerNorm + ReLU (Dropout = identity, eval mode)
        x = jnp.dot(pooled.astype(jnp.bfloat16), w1_ref[...],
                    preferred_element_type=jnp.float32) + b1_ref[...]
        x = _layernorm(x, g1_ref[...], be1_ref[...])
        x = jnp.maximum(x, 0.0)

        # Linear(512 -> 256) + LayerNorm + ReLU
        x = jnp.dot(x.astype(jnp.bfloat16), w2_ref[...],
                    preferred_element_type=jnp.float32) + b2_ref[...]
        x = _layernorm(x, g2_ref[...], be2_ref[...])
        x = jnp.maximum(x, 0.0)

        # Linear(256 -> 128)
        x = jnp.dot(x.astype(jnp.bfloat16), w3_ref[...],
                    preferred_element_type=jnp.float32) + b3_ref[...]

        out_ref[...] = x.astype(out_ref.dtype)


def _pooled_projection(hidden_states, attention_mask, params):
    """Masked mean pooling + projection head for the fused doc1|doc2 batch."""
    btot, seq, hidden = hidden_states.shape
    per_buf, vmem_limit = _vmem_budgets()
    tb, ts = _choose_tiles(btot, seq, hidden, per_buf)
    bp = _round_up(btot, tb)
    sp = _round_up(seq, ts)

    h = hidden_states.astype(jnp.bfloat16)            # no-op: emb table is bf16
    m = attention_mask.astype(jnp.bfloat16)[:, :, None]          # [btot, seq, 1]

    if bp != btot or sp != seq:
        h = jnp.pad(h, ((0, bp - btot), (0, sp - seq), (0, 0)))
        m = jnp.pad(m, ((0, bp - btot), (0, sp - seq), (0, 0)))

    w1 = params["w1"].astype(jnp.bfloat16)
    w2 = params["w2"].astype(jnp.bfloat16)
    w3 = params["w3"].astype(jnp.bfloat16)

    def const(shape):
        # Constant block index -> weight stays VMEM-resident across the grid.
        return pl.BlockSpec(shape, lambda b, s: (0, 0))

    grid = (bp // tb, sp // ts)
    out = pl.pallas_call(
        _projection_kernel,
        out_shape=jax.ShapeDtypeStruct((bp, 128), jnp.float32),
        grid_spec=pltpu.PrefetchScalarGridSpec(
            num_scalar_prefetch=0,
            grid=grid,
            in_specs=[
                pl.BlockSpec((tb, ts, hidden), lambda b, s: (b, s, 0)),  # h
                pl.BlockSpec((tb, ts, 1), lambda b, s: (b, s, 0)),       # mask
                const((hidden, 512)), const((1, 512)),
                const((1, 512)), const((1, 512)),
                const((512, 256)), const((1, 256)),
                const((1, 256)), const((1, 256)),
                const((256, 128)), const((1, 128)),
            ],
            out_specs=pl.BlockSpec((tb, 128), lambda b, s: (b, 0)),
            scratch_shapes=[pltpu.VMEM((tb, hidden), jnp.float32),
                            pltpu.VMEM((tb, 1), jnp.float32)],
        ),
        compiler_params=pltpu.CompilerParams(
            dimension_semantics=("parallel", "arbitrary"),
            vmem_limit_bytes=vmem_limit,
        ),
    )(h, m,
      w1, params["b1"], params["g1"], params["be1"],
      w2, params["b2"], params["g2"], params["be2"],
      w3, params["b3"])
    return out[:btot]


def init_params(key, hidden=32, vocab=100):
    ks = jax.random.split(key, 8)
    scale = 0.02
    return {
        # RoBERTa stand-in: deterministic word-embedding table, stored bf16 so
        # the gather emits the kernel's streaming dtype directly.
        "emb": (jax.random.normal(ks[0], (vocab, hidden), jnp.float32)
                * scale).astype(jnp.bfloat16),
        # projection head (math weights kept f32; cast to bf16 at call time)
        "w1": jax.random.normal(ks[1], (hidden, 512), jnp.float32) * scale,
        "b1": jnp.zeros((1, 512), jnp.float32),
        "g1": jnp.ones((1, 512), jnp.float32),
        "be1": jnp.zeros((1, 512), jnp.float32),
        "w2": jax.random.normal(ks[2], (512, 256), jnp.float32) * scale,
        "b2": jnp.zeros((1, 256), jnp.float32),
        "g2": jnp.ones((1, 256), jnp.float32),
        "be2": jnp.zeros((1, 256), jnp.float32),
        "w3": jax.random.normal(ks[3], (256, 128), jnp.float32) * scale,
        "b3": jnp.zeros((1, 128), jnp.float32),
    }


@jax.jit
def contrastive_authorship_forward(params, input_ids1, attention_mask1,
                                   input_ids2, attention_mask2):
    b = input_ids1.shape[0]
    # Concatenate the tiny int32 ids/masks BEFORE the embedding gather: the
    # big [2B,S,H] stream is produced exactly once, directly in bf16.
    ids = jnp.concatenate([input_ids1, input_ids2], axis=0)        # [2B, S]
    mask = jnp.concatenate([attention_mask1, attention_mask2], axis=0)
    # "roberta(...).last_hidden_state" stand-in (plain JAX glue): bf16 gather.
    # TODO(synk): the pretrained RoBERTa transformer encoder itself has no
    #             in-script equivalent; only its output interface is emulated.
    h = params["emb"][ids]                                         # [2B, S, H]
    emb = _pooled_projection(h, mask, params)
    return emb[:b], emb[b:]


if __name__ == "__main__":
    B, S, H, V = 2, 8, 32, 100
    key = jax.random.PRNGKey(0)
    k_param, k_ids1, k_ids2 = jax.random.split(key, 3)

    params = init_params(k_param, hidden=H, vocab=V)

    input_ids1 = jax.random.randint(k_ids1, (B, S), 0, V, dtype=jnp.int32)
    input_ids2 = jax.random.randint(k_ids2, (B, S), 0, V, dtype=jnp.int32)
    # Deterministic masks: first doc fully attended, second has 2 padding tokens.
    attention_mask1 = jnp.ones((B, S), jnp.int32)
    attention_mask2 = jnp.concatenate(
        [jnp.ones((B, S - 2), jnp.int32), jnp.zeros((B, 2), jnp.int32)], axis=1)

    emb1, emb2 = contrastive_authorship_forward(
        params, input_ids1, attention_mask1, input_ids2, attention_mask2)
    jax.block_until_ready((emb1, emb2))

    assert emb1.shape == (B, 128) and emb2.shape == (B, 128)
    assert jnp.all(jnp.isfinite(emb1)) and jnp.all(jnp.isfinite(emb2))
    print("KERNEL_OK")
</pallas_src>

<mosaic_0001>
module attributes {stable_mosaic.version = 11 : i64} {
  func.func @_projection_kernel(%arg0: i32, %arg1: i32, %arg2: memref<8x8x32xbf16, #tpu.memory_space<vmem>>, %arg3: memref<8x8x1xbf16, #tpu.memory_space<vmem>>, %arg4: memref<32x512xbf16, #tpu.memory_space<vmem>>, %arg5: memref<1x512xf32, #tpu.memory_space<vmem>>, %arg6: memref<1x512xf32, #tpu.memory_space<vmem>>, %arg7: memref<1x512xf32, #tpu.memory_space<vmem>>, %arg8: memref<512x256xbf16, #tpu.memory_space<vmem>>, %arg9: memref<1x256xf32, #tpu.memory_space<vmem>>, %arg10: memref<1x256xf32, #tpu.memory_space<vmem>>, %arg11: memref<1x256xf32, #tpu.memory_space<vmem>>, %arg12: memref<256x128xbf16, #tpu.memory_space<vmem>>, %arg13: memref<1x128xf32, #tpu.memory_space<vmem>>, %arg14: memref<8x128xf32, #tpu.memory_space<vmem>>, %arg15: memref<8x32xf32, #tpu.memory_space<vmem>>, %arg16: memref<8x1xf32, #tpu.memory_space<vmem>>) attributes {dimension_semantics = [#tpu.dimension_semantics<parallel>, #tpu.dimension_semantics<arbitrary>], iteration_bounds = array<i64: 1, 1>, scalar_prefetch = 0 : i64, scratch_operands = 2 : i64, tpu.core_type = #tpu.core_type<tc>, window_params = [{transform_indices = @transform_0, window_bounds = array<i64: 8, 8, 32>}, {transform_indices = @transform_1, window_bounds = array<i64: 8, 8, 1>}, {pipeline_mode = #tpu.pipeline_mode<synchronous>, transform_indices = @transform_2, window_bounds = array<i64: 32, 512>}, {pipeline_mode = #tpu.pipeline_mode<synchronous>, transform_indices = @transform_3, window_bounds = array<i64: 1, 512>}, {pipeline_mode = #tpu.pipeline_mode<synchronous>, transform_indices = @transform_4, window_bounds = array<i64: 1, 512>}, {pipeline_mode = #tpu.pipeline_mode<synchronous>, transform_indices = @transform_5, window_bounds = array<i64: 1, 512>}, {pipeline_mode = #tpu.pipeline_mode<synchronous>, transform_indices = @transform_6, window_bounds = array<i64: 512, 256>}, {pipeline_mode = #tpu.pipeline_mode<synchronous>, transform_indices = @transform_7, window_bounds = array<i64: 1, 256>}, {pipeline_mode = #tpu.pipeline_mode<synchronous>, transform_indices = @transform_8, window_bounds = array<i64: 1, 256>}, {pipeline_mode = #tpu.pipeline_mode<synchronous>, transform_indices = @transform_9, window_bounds = array<i64: 1, 256>}, {pipeline_mode = #tpu.pipeline_mode<synchronous>, transform_indices = @transform_10, window_bounds = array<i64: 256, 128>}, {pipeline_mode = #tpu.pipeline_mode<synchronous>, transform_indices = @transform_11, window_bounds = array<i64: 1, 128>}, {transform_indices = @transform_12, window_bounds = array<i64: 8, 128>}]} {
    %c0_i32 = arith.constant 0 : i32
    %0 = arith.cmpi eq, %arg1, %c0_i32 : i32
    %1 = arith.extui %0 : i1 to i32
    %c0_i32_0 = arith.constant 0 : i32
    %2 = arith.cmpi ne, %1, %c0_i32_0 : i32
    scf.if %2 {
      %cst_17 = arith.constant 0.000000e+00 : f32
      %20 = vector.broadcast %cst_17 : f32 to vector<8x32xf32>
      %c0_18 = arith.constant 0 : index
      %c0_19 = arith.constant 0 : index
      %21 = vector.load %arg15[%c0_18, %c0_19] : memref<8x32xf32, #tpu.memory_space<vmem>>, vector<8x32xf32>
      tpu.vector_store %arg15[%c0_18, %c0_19], %20 {strides = array<i32>} : memref<8x32xf32, #tpu.memory_space<vmem>>, vector<8x32xf32>,
      %cst_20 = arith.constant 0.000000e+00 : f32
      %22 = vector.broadcast %cst_20 : f32 to vector<8x1xf32>
      %c0_21 = arith.constant 0 : index
      %c0_22 = arith.constant 0 : index
      %23 = vector.load %arg16[%c0_21, %c0_22] : memref<8x1xf32, #tpu.memory_space<vmem>>, vector<8x1xf32>
      tpu.vector_store %arg16[%c0_21, %c0_22], %22 {strides = array<i32>} : memref<8x1xf32, #tpu.memory_space<vmem>>, vector<8x1xf32>,
    } else {
    }
    %c0 = arith.constant 0 : index
    %c0_1 = arith.constant 0 : index
    %c0_2 = arith.constant 0 : index
    %3 = vector.load %arg2[%c0, %c0_1, %c0_2] : memref<8x8x32xbf16, #tpu.memory_space<vmem>>, vector<8x8x32xbf16>
    %c0_3 = arith.constant 0 : index
    %c0_4 = arith.constant 0 : index
    %c0_5 = arith.constant 0 : index
    %4 = vector.load %arg3[%c0_3, %c0_4, %c0_5] : memref<8x8x1xbf16, #tpu.memory_space<vmem>>, vector<8x8x1xbf16>
    %c0_6 = arith.constant 0 : index
    %c0_7 = arith.constant 0 : index
    %5 = vector.load %arg15[%c0_6, %c0_7] : memref<8x32xf32, #tpu.memory_space<vmem>>, vector<8x32xf32>
    %6 = vector.broadcast %4 : vector<8x8x1xbf16> to vector<8x8x32xbf16>
    %7 = arith.mulf %3, %6 : vector<8x8x32xbf16>
    %8 = arith.extf %7 : vector<8x8x32xbf16> to vector<8x8x32xf32>
    %cst = arith.constant dense<0.000000e+00> : vector<8x32xf32>
    %9 = vector.multi_reduction <add>, %8, %cst [1] : vector<8x8x32xf32> to vector<8x32xf32>
    %10 = arith.addf %5, %9 : vector<8x32xf32>
    %c0_8 = arith.constant 0 : index
    %c0_9 = arith.constant 0 : index
    %11 = vector.load %arg15[%c0_8, %c0_9] : memref<8x32xf32, #tpu.memory_space<vmem>>, vector<8x32xf32>
    tpu.vector_store %arg15[%c0_8, %c0_9], %10 {strides = array<i32>} : memref<8x32xf32, #tpu.memory_space<vmem>>, vector<8x32xf32>,
    %c0_10 = arith.constant 0 : index
    %c0_11 = arith.constant 0 : index
    %12 = vector.load %arg16[%c0_10, %c0_11] : memref<8x1xf32, #tpu.memory_space<vmem>>, vector<8x1xf32>
    %13 = arith.extf %4 : vector<8x8x1xbf16> to vector<8x8x1xf32>
    %cst_12 = arith.constant dense<0.000000e+00> : vector<8x1xf32>
    %14 = vector.multi_reduction <add>, %13, %cst_12 [1] : vector<8x8x1xf32> to vector<8x1xf32>
    %15 = arith.addf %12, %14 : vector<8x1xf32>
    %c0_13 = arith.constant 0 : index
    %c0_14 = arith.constant 0 : index
    %16 = vector.load %arg16[%c0_13, %c0_14] : memref<8x1xf32, #tpu.memory_space<vmem>>, vector<8x1xf32>
    tpu.vector_store %arg16[%c0_13, %c0_14], %15 {strides = array<i32>} : memref<8x1xf32, #tpu.memory_space<vmem>>, vector<8x1xf32>,
    %c0_i32_15 = arith.constant 0 : i32
    %17 = arith.cmpi eq, %arg1, %c0_i32_15 : i32
    %18 = arith.extui %17 : i1 to i32
    %c0_i32_16 = arith.constant 0 : i32
    %19 = arith.cmpi ne, %18, %c0_i32_16 : i32
    scf.if %19 {
      %c0_17 = arith.constant 0 : index
      %c0_18 = arith.constant 0 : index
      %20 = vector.load %arg16[%c0_17, %c0_18] : memref<8x1xf32, #tpu.memory_space<vmem>>, vector<8x1xf32>
      %cst_19 = arith.constant 9.99999971E-10 : f32
      %21 = vector.broadcast %cst_19 : f32 to vector<8x1xf32>
      %22 = arith.maximumf %20, %21 : vector<8x1xf32>
      %c0_20 = arith.constant 0 : index
      %c0_21 = arith.constant 0 : index
      %23 = vector.load %arg15[%c0_20, %c0_21] : memref<8x32xf32, #tpu.memory_space<vmem>>, vector<8x32xf32>
      %24 = vector.broadcast %22 : vector<8x1xf32> to vector<8x32xf32>
      %25 = arith.divf %23, %24 : vector<8x32xf32>
      %26 = arith.truncf %25 : vector<8x32xf32> to vector<8x32xbf16>
      %c0_22 = arith.constant 0 : index
      %c0_23 = arith.constant 0 : index
      %27 = vector.load %arg4[%c0_22, %c0_23] : memref<32x512xbf16, #tpu.memory_space<vmem>>, vector<32x512xbf16>
      %cst_24 = arith.constant dense<0.000000e+00> : vector<8x512xf32>
      %28 = tpu.matmul %26, %27, %cst_24 {dimension_numbers = #tpu.dot_dimension_numbers<[1], [0], [0], [1], [0, 0, 1, 1], [], []>} : vector<8x32xbf16>, vector<32x512xbf16>, vector<8x512xf32> -> vector<8x512xf32>
      %c0_25 = arith.constant 0 : index
      %c0_26 = arith.constant 0 : index
      %29 = vector.load %arg5[%c0_25, %c0_26] : memref<1x512xf32, #tpu.memory_space<vmem>>, vector<1x512xf32>
      %30 = vector.broadcast %29 : vector<1x512xf32> to vector<8x512xf32>
      %31 = arith.addf %28, %30 : vector<8x512xf32>
      %c0_27 = arith.constant 0 : index
      %c0_28 = arith.constant 0 : index
      %32 = vector.load %arg6[%c0_27, %c0_28] : memref<1x512xf32, #tpu.memory_space<vmem>>, vector<1x512xf32>
      %c0_29 = arith.constant 0 : index
      %c0_30 = arith.constant 0 : index
      %33 = vector.load %arg7[%c0_29, %c0_30] : memref<1x512xf32, #tpu.memory_space<vmem>>, vector<1x512xf32>
      %cst_31 = arith.constant dense<0.000000e+00> : vector<8xf32>
      %34 = vector.multi_reduction <add>, %31, %cst_31 [1] : vector<8x512xf32> to vector<8xf32>
      %35 = vector.shape_cast %34 : vector<8xf32> to vector<8x1xf32>
      %cst_32 = arith.constant 5.120000e+02 : f32
      %36 = vector.broadcast %cst_32 : f32 to vector<8x1xf32>
      %37 = arith.divf %35, %36 : vector<8x1xf32>
      %38 = vector.broadcast %37 : vector<8x1xf32> to vector<8x512xf32>
      %39 = arith.subf %31, %38 : vector<8x512xf32>
      %40 = arith.mulf %39, %39 : vector<8x512xf32>
      %cst_33 = arith.constant dense<0.000000e+00> : vector<8xf32>
      %41 = vector.multi_reduction <add>, %40, %cst_33 [1] : vector<8x512xf32> to vector<8xf32>
      %42 = vector.shape_cast %41 : vector<8xf32> to vector<8x1xf32>
      %cst_34 = arith.constant 5.120000e+02 : f32
      %43 = vector.broadcast %cst_34 : f32 to vector<8x1xf32>
      %44 = arith.divf %42, %43 : vector<8x1xf32>
      %cst_35 = arith.constant 9.99999974E-6 : f32
      %45 = vector.broadcast %cst_35 : f32 to vector<8x1xf32>
      %46 = arith.addf %44, %45 : vector<8x1xf32>
      %47 = math.rsqrt %46 : vector<8x1xf32>
      %48 = vector.broadcast %37 : vector<8x1xf32> to vector<8x512xf32>
      %49 = arith.subf %31, %48 : vector<8x512xf32>
      %50 = vector.broadcast %47 : vector<8x1xf32> to vector<8x512xf32>
      %51 = arith.mulf %49, %50 : vector<8x512xf32>
      %52 = vector.broadcast %32 : vector<1x512xf32> to vector<8x512xf32>
      %53 = arith.mulf %51, %52 : vector<8x512xf32>
      %54 = vector.broadcast %33 : vector<1x512xf32> to vector<8x512xf32>
      %55 = arith.addf %53, %54 : vector<8x512xf32>
      %cst_36 = arith.constant 0.000000e+00 : f32
      %56 = vector.broadcast %cst_36 : f32 to vector<8x512xf32>
      %57 = arith.maximumf %55, %56 : vector<8x512xf32>
      %58 = arith.truncf %57 : vector<8x512xf32> to vector<8x512xbf16>
      %c0_37 = arith.constant 0 : index
      %c0_38 = arith.constant 0 : index
      %59 = vector.load %arg8[%c0_37, %c0_38] : memref<512x256xbf16, #tpu.memory_space<vmem>>, vector<512x256xbf16>
      %cst_39 = arith.constant dense<0.000000e+00> : vector<8x256xf32>
      %60 = tpu.matmul %58, %59, %cst_39 {dimension_numbers = #tpu.dot_dimension_numbers<[1], [0], [0], [1], [0, 0, 1, 1], [], []>} : vector<8x512xbf16>, vector<512x256xbf16>, vector<8x256xf32> -> vector<8x256xf32>
      %c0_40 = arith.constant 0 : index
      %c0_41 = arith.constant 0 : index
      %61 = vector.load %arg9[%c0_40, %c0_41] : memref<1x256xf32, #tpu.memory_space<vmem>>, vector<1x256xf32>
      %62 = vector.broadcast %61 : vector<1x256xf32> to vector<8x256xf32>
      %63 = arith.addf %60, %62 : vector<8x256xf32>
      %c0_42 = arith.constant 0 : index
      %c0_43 = arith.constant 0 : index
      %64 = vector.load %arg10[%c0_42, %c0_43] : memref<1x256xf32, #tpu.memory_space<vmem>>, vector<1x256xf32>
      %c0_44 = arith.constant 0 : index
      %c0_45 = arith.constant 0 : index
      %65 = vector.load %arg11[%c0_44, %c0_45] : memref<1x256xf32, #tpu.memory_space<vmem>>, vector<1x256xf32>
      %cst_46 = arith.constant dense<0.000000e+00> : vector<8xf32>
      %66 = vector.multi_reduction <add>, %63, %cst_46 [1] : vector<8x256xf32> to vector<8xf32>
      %67 = vector.shape_cast %66 : vector<8xf32> to vector<8x1xf32>
      %cst_47 = arith.constant 2.560000e+02 : f32
      %68 = vector.broadcast %cst_47 : f32 to vector<8x1xf32>
      %69 = arith.divf %67, %68 : vector<8x1xf32>
      %70 = vector.broadcast %69 : vector<8x1xf32> to vector<8x256xf32>
      %71 = arith.subf %63, %70 : vector<8x256xf32>
      %72 = arith.mulf %71, %71 : vector<8x256xf32>
      %cst_48 = arith.constant dense<0.000000e+00> : vector<8xf32>
      %73 = vector.multi_reduction <add>, %72, %cst_48 [1] : vector<8x256xf32> to vector<8xf32>
      %74 = vector.shape_cast %73 : vector<8xf32> to vector<8x1xf32>
      %cst_49 = arith.constant 2.560000e+02 : f32
      %75 = vector.broadcast %cst_49 : f32 to vector<8x1xf32>
      %76 = arith.divf %74, %75 : vector<8x1xf32>
      %cst_50 = arith.constant 9.99999974E-6 : f32
      %77 = vector.broadcast %cst_50 : f32 to vector<8x1xf32>
      %78 = arith.addf %76, %77 : vector<8x1xf32>
      %79 = math.rsqrt %78 : vector<8x1xf32>
      %80 = vector.broadcast %69 : vector<8x1xf32> to vector<8x256xf32>
      %81 = arith.subf %63, %80 : vector<8x256xf32>
      %82 = vector.broadcast %79 : vector<8x1xf32> to vector<8x256xf32>
      %83 = arith.mulf %81, %82 : vector<8x256xf32>
      %84 = vector.broadcast %64 : vector<1x256xf32> to vector<8x256xf32>
      %85 = arith.mulf %83, %84 : vector<8x256xf32>
      %86 = vector.broadcast %65 : vector<1x256xf32> to vector<8x256xf32>
      %87 = arith.addf %85, %86 : vector<8x256xf32>
      %cst_51 = arith.constant 0.000000e+00 : f32
      %88 = vector.broadcast %cst_51 : f32 to vector<8x256xf32>
      %89 = arith.maximumf %87, %88 : vector<8x256xf32>
      %90 = arith.truncf %89 : vector<8x256xf32> to vector<8x256xbf16>
      %c0_52 = arith.constant 0 : index
      %c0_53 = arith.constant 0 : index
      %91 = vector.load %arg12[%c0_52, %c0_53] : memref<256x128xbf16, #tpu.memory_space<vmem>>, vector<256x128xbf16>
      %cst_54 = arith.constant dense<0.000000e+00> : vector<8x128xf32>
      %92 = tpu.matmul %90, %91, %cst_54 {dimension_numbers = #tpu.dot_dimension_numbers<[1], [0], [0], [1], [0, 0, 1, 1], [], []>} : vector<8x256xbf16>, vector<256x128xbf16>, vector<8x128xf32> -> vector<8x128xf32>
      %c0_55 = arith.constant 0 : index
      %c0_56 = arith.constant 0 : index
      %93 = vector.load %arg13[%c0_55, %c0_56] : memref<1x128xf32, #tpu.memory_space<vmem>>, vector<1x128xf32>
      %94 = vector.broadcast %93 : vector<1x128xf32> to vector<8x128xf32>
      %95 = arith.addf %92, %94 : vector<8x128xf32>
      %c0_57 = arith.constant 0 : index
      %c0_58 = arith.constant 0 : index
      %96 = vector.load %arg14[%c0_57, %c0_58] : memref<8x128xf32, #tpu.memory_space<vmem>>, vector<8x128xf32>
      tpu.vector_store %arg14[%c0_57, %c0_58], %95 {strides = array<i32>} : memref<8x128xf32, #tpu.memory_space<vmem>>, vector<8x128xf32>,
    } else {
    }
    return
  }
  func.func @transform_0(%arg0: i32, %arg1: i32) -> (i32, i32, i32) {
    %c0_i32 = arith.constant 0 : i32
    %c0_i32_0 = arith.constant 0 : i32
    return %arg0, %arg1, %c0_i32 : i32, i32, i32
  }
  func.func @transform_1(%arg0: i32, %arg1: i32) -> (i32, i32, i32) {
    %c0_i32 = arith.constant 0 : i32
    %c0_i32_0 = arith.constant 0 : i32
    return %arg0, %arg1, %c0_i32 : i32, i32, i32
  }
  func.func @transform_2(%arg0: i32, %arg1: i32) -> (i32, i32) {
    %c0_i32 = arith.constant 0 : i32
    %c0_i32_0 = arith.constant 0 : i32
    %c0_i32_1 = arith.constant 0 : i32
    return %c0_i32, %c0_i32_0 : i32, i32
  }
  func.func @transform_3(%arg0: i32, %arg1: i32) -> (i32, i32) {
    %c0_i32 = arith.constant 0 : i32
    %c0_i32_0 = arith.constant 0 : i32
    %c0_i32_1 = arith.constant 0 : i32
    return %c0_i32, %c0_i32_0 : i32, i32
  }
  func.func @transform_4(%arg0: i32, %arg1: i32) -> (i32, i32) {
    %c0_i32 = arith.constant 0 : i32
    %c0_i32_0 = arith.constant 0 : i32
    %c0_i32_1 = arith.constant 0 : i32
    return %c0_i32, %c0_i32_0 : i32, i32
  }
  func.func @transform_5(%arg0: i32, %arg1: i32) -> (i32, i32) {
    %c0_i32 = arith.constant 0 : i32
    %c0_i32_0 = arith.constant 0 : i32
    %c0_i32_1 = arith.constant 0 : i32
    return %c0_i32, %c0_i32_0 : i32, i32
  }
  func.func @transform_6(%arg0: i32, %arg1: i32) -> (i32, i32) {
    %c0_i32 = arith.constant 0 : i32
    %c0_i32_0 = arith.constant 0 : i32
    %c0_i32_1 = arith.constant 0 : i32
    return %c0_i32, %c0_i32_0 : i32, i32
  }
  func.func @transform_7(%arg0: i32, %arg1: i32) -> (i32, i32) {
    %c0_i32 = arith.constant 0 : i32
    %c0_i32_0 = arith.constant 0 : i32
    %c0_i32_1 = arith.constant 0 : i32
    return %c0_i32, %c0_i32_0 : i32, i32
  }
  func.func @transform_8(%arg0: i32, %arg1: i32) -> (i32, i32) {
    %c0_i32 = arith.constant 0 : i32
    %c0_i32_0 = arith.constant 0 : i32
    %c0_i32_1 = arith.constant 0 : i32
    return %c0_i32, %c0_i32_0 : i32, i32
  }
  func.func @transform_9(%arg0: i32, %arg1: i32) -> (i32, i32) {
    %c0_i32 = arith.constant 0 : i32
    %c0_i32_0 = arith.constant 0 : i32
    %c0_i32_1 = arith.constant 0 : i32
    return %c0_i32, %c0_i32_0 : i32, i32
  }
  func.func @transform_10(%arg0: i32, %arg1: i32) -> (i32, i32) {
    %c0_i32 = arith.constant 0 : i32
    %c0_i32_0 = arith.constant 0 : i32
    %c0_i32_1 = arith.constant 0 : i32
    return %c0_i32, %c0_i32_0 : i32, i32
  }
  func.func @transform_11(%arg0: i32, %arg1: i32) -> (i32, i32) {
    %c0_i32 = arith.constant 0 : i32
    %c0_i32_0 = arith.constant 0 : i32
    %c0_i32_1 = arith.constant 0 : i32
    return %c0_i32, %c0_i32_0 : i32, i32
  }
  func.func @transform_12(%arg0: i32, %arg1: i32) -> (i32, i32) {
    %c0_i32 = arith.constant 0 : i32
    %c0_i32_0 = arith.constant 0 : i32
    return %arg0, %c0_i32 : i32, i32
  }
}

</mosaic_0001>

<bundles_post_ra>
// kernel: contrastive_authorship_forward.1
= control target key start
LH: loop header
LB: loop body
LE: loop exit
PB: predicated region body
PF: predicated region fallthrough
CT: control target
= control target key end

     0   :  { %vm48_vm0 = vcmask 7168   ;;  %v1560_v0 = vmov 0   ;;  %v1561_v36 = vmov 0.0   ;;  %vm244_vm1 = vcmask 1041409   ;;  %s2073_s1 = inlined_call_operand.vmem [shape: bf16[8,8,1], index: 1, kind: input, shape index: {}]   ;;  %s2074_s2 = inlined_call_operand.vmem [shape: bf16[32,512], index: 2, kind: input, shape index: {}]   ;;  %s2075_s0 = inlined_call_operand.vmem [shape: bf16[8,8,32], index: 0, kind: input, shape index: {}]   ;;  %s2076_s3 = inlined_call_operand.vmem [shape: f32[1,512], index: 3, kind: input, shape index: {}]   ;;  %s2077_s6 = inlined_call_operand.vmem [shape: bf16[512,256], index: 6, kind: input, shape index: {}]   ;;  %s2078_s4 = inlined_call_operand.vmem [shape: f32[1,512], index: 4, kind: input, shape index: {}]   ;;  %s2079_s5 = inlined_call_operand.vmem [shape: f32[1,512], index: 5, kind: input, shape index: {}]   ;;  %s2080_s7 = inlined_call_operand.vmem [shape: f32[1,256], index: 7, kind: input, shape index: {}]   ;;  %s2081_s10 = inlined_call_operand.vmem [shape: bf16[256,128], index: 10, kind: input, shape index: {}]   ;;  %s2082_s8 = inlined_call_operand.vmem [shape: f32[1,256], index: 8, kind: input, shape index: {}]   ;;  %s2083_s9 = inlined_call_operand.vmem [shape: f32[1,256], index: 9, kind: input, shape index: {}]   ;;  %s2084_s11 = inlined_call_operand.vmem [shape: f32[1,128], index: 11, kind: input, shape index: {}]   ;;  %s2085_s12 = inlined_call_operand.vmem [shape: f32[8,128], index: 12, kind: output, shape index: {}]  }
   0x1   :  { %1429 = vset.pattern.permute.xlu1 %v1560_v0  ;;  %1428 = vset.pattern.permute.xlu0 %v1560_v0  ;;  %v60_v1 = vld [vmem:[%s2073_s1 + $0x8] sm:$0xf]  ;;  %v58_v2 = vld [vmem:[%s2073_s1] sm:$0xf]  ;;  %v61_v3 = vld [vmem:[%s2073_s1 + $0xc] sm:$0xf] }
   0x2   :  { %93 = vperm.xlu1 %1429, %v60_v1   ;;  %v264_v4 = vunpack.c.l.bf16 %v60_v1  ;;  %69 = vperm.xlu0 %1428, %v58_v2   ;;  %v262_v5 = vunpack.c.l.bf16 %v58_v2  ;;  %v265_v6 = vunpack.c.l.bf16 %v61_v3  ;;  %v59_v7 = vld [vmem:[%s2073_s1 + $0x4] sm:$0xf]  ;;  %v63_v8 = vld [vmem:[%s2073_s1 + $0x14] sm:$0xf]  ;;  %v62_v9 = vld [vmem:[%s2073_s1 + $0x10] sm:$0xf] }
   0x3   :  { %v263_v10 = vunpack.c.l.bf16 %v59_v7  ;;  %v267_v11 = vunpack.c.l.bf16 %v63_v8  ;;  %v65_v12 = vld [vmem:[%s2073_s1 + $0x1c] sm:$0xf]  ;;  %464 = vmatprep.mubr.bf16.mxu0 %v1560_v0  ;;  %v266_v16 = vunpack.c.l.bf16 %v62_v9  ;;  %49 = vst.msk [vmem:[#allocation3] sm:$0xff] %vm48_vm0, %v1561_v36  ;;  %v64_v49 = vld [vmem:[%s2073_s1 + $0x18] sm:$0xf]  ;;  %vm246_vm2 = vcmask 1042434  }
   0x4   :  { %v285_v13 = vsel %vm48_vm0, %v264_v4, 0.0  ;;  %v271_v14 = vsel %vm48_vm0, %v262_v5, 0.0  ;;  %v292_v15 = vsel %vm48_vm0, %v265_v6, 0.0  ;;  %v269_v24 = vunpack.c.l.bf16 %v65_v12 }
   0x5   :  { %v286_v17 = vrot.slane %v285_v13, 4  ;;  %v272_v18 = vrot.slane %v271_v14, 4  ;;  %v293_v19 = vrot.slane %v292_v15, 4  ;;  %v278_v20 = vsel %vm48_vm0, %v263_v10, 0.0 }
   0x6   :  { %105 = vperm.xlu1 %1429, %v61_v3   ;;  %v279_v21 = vrot.slane %v278_v20, 4  ;;  %81 = vperm.xlu0 %1428, %v59_v7   ;;  %v306_v22 = vsel %vm48_vm0, %v267_v11, 0.0  ;;  %v299_v23 = vsel %vm48_vm0, %v266_v16, 0.0  ;;  %v320_v31 = vsel %vm48_vm0, %v269_v24, 0.0  ;;  %v1433_v24 = vld [vmem:[%s2074_s2 + $0x24] ss:$16 sps:$4 sm:$0xff]  }
   0x7   :  { %v287_v25 = vadd.f32 %v286_v17, %v285_v13  ;;  %v273_v26 = vadd.f32 %v272_v18, %v271_v14  ;;  %v294_v27 = vadd.f32 %v293_v19, %v292_v15  ;;  %v307_v28 = vrot.slane %v306_v22, 4 }
   0x8   :  { %v280_v29 = vadd.f32 %v279_v21, %v278_v20  ;;  %v300_v30 = vrot.slane %v299_v23, 4  ;;  %v321_v39 = vrot.slane %v320_v31, 4  ;;  %v268_v58 = vunpack.c.l.bf16 %v64_v49 }
   0x9   :  { %v288_v32 = vrot.slane %v287_v25, 2  ;;  %v274_v33 = vrot.slane %v273_v26, 2  ;;  %v295_v34 = vrot.slane %v294_v27, 2  ;;  %v308_v35 = vadd.f32 %v307_v28, %v306_v22  ;;  %v1430_v22 = vld [vmem:[%s2074_s2 + $0x4] ss:$16 sps:$4 sm:$0xff]  }
   0xa   :  { %v281_v37 = vrot.slane %v280_v29, 2  ;;  %129 = vperm.xlu1 %1429, %v63_v8   ;;  %v301_v38 = vadd.f32 %v300_v30, %v299_v23  ;;  %117 = vperm.xlu0 %1428, %v62_v9   ;;  %v322_v46 = vadd.f32 %v321_v39, %v320_v31  ;;  %vm46_vm3 = vcmask 261120   ;;  %v261_v16 = vld [vmem:[#allocation3] sm:$0xff]  ;;  %v1432_v23 = vld [vmem:[%s2074_s2] ss:$16 sps:$4 sm:$0xff]  }
   0xb   :  { %v289_v40 = vadd.f32 %v288_v32, %v287_v25  ;;  %v275_v41 = vadd.f32 %v274_v33, %v273_v26  ;;  %v296_v42 = vadd.f32 %v295_v34, %v294_v27  ;;  %v309_v44 = vrot.slane %v308_v35, 2  ;;  %47 = vst.msk [vmem:[#allocation2] sm:$0xff] %vm46_vm3, %v1561_v36  ;;  %432 = vmatprep.subr.bf16.mxu0 %v1430_v22  ;;  %v1435_v25 = vld [vmem:[%s2074_s2 + $0x20] ss:$16 sps:$4 sm:$0xff]   ;;  %v1438_v26 = vld [vmem:[%s2074_s2 + $0xc] ss:$16 sps:$4 sm:$0xff]  }
   0xc   :  { %v282_v43 = vadd.f32 %v281_v37, %v280_v29  ;;  %v302_v45 = vrot.slane %v301_v38, 2  ;;  %v323_v57 = vrot.slane %v322_v46, 2  ;;  %v313_v62 = vsel %vm48_vm0, %v268_v58, 0.0  ;;  %433 = vmatpush1.bf16.msra.mxu0 %v1432_v23  ;;  %v52_v34 = vld [vmem:[%s2075_s0 + $0x8] sm:$0xf] }
   0xd   :  { %v290_v47 = vrot.slane %v289_v40, 1  ;;  %v276_v48 = vrot.slane %v275_v41, 1  ;;  %v297_v50 = vrot.slane %v296_v42, 1  ;;  %v310_v56 = vadd.f32 %v309_v44, %v308_v35  ;;  %434 = vmatprep.subr.bf16.mxu0 %v1433_v24  ;;  %v50_v36 = vld [vmem:[%s2075_s0] sm:$0xf] }
   0xe   :  { %v283_v51 = vrot.slane %v282_v43, 1  ;;  %v303_v52 = vadd.f32 %v302_v45, %v301_v38  ;;  %153 = vperm.xlu1 %1429, %v65_v12   ;;  %141 = vperm.xlu0 %1428, %v64_v49   ;;  %vm248_vm4 = vcmask 1043459   ;;  %v314_v1 = vrot.slane %v313_v62, 4  ;;  %v51_v44 = vld [vmem:[%s2075_s0 + $0x4] sm:$0xf] }
   0xf   :  { %v291_v53 = vadd.f32 %v290_v47, %v289_v40  ;;  %v277_v54 = vadd.f32 %v276_v48, %v275_v41  ;;  %v298_v60 = vadd.f32 %v297_v50, %v296_v42  ;;  %v311_v2 = vrot.slane %v310_v56, 1  ;;  %v53_v42 = vld [vmem:[%s2075_s0 + $0xc] sm:$0xf]  ;;  %v54_v58 = vld [vmem:[%s2075_s0 + $0x10] sm:$0xf] }
  0x10   :  { %v284_v55 = vadd.f32 %v283_v51, %v282_v43  ;;  %v304_v59 = vrot.slane %v303_v52, 1  ;;  %v324_v3 = vadd.f32 %v323_v57, %v322_v46  ;;  %v315_v5 = vadd.f32 %v314_v1, %v313_v62  ;;  %435 = vmatpush1.bf16.msra.mxu0 %v1435_v25 }
  0x11   :  { %vm250_vm5 = vcmask 1044484   ;;  %v312_v8 = vadd.f32 %v311_v2, %v310_v56  ;;  %vm252_vm6 = vcmask 1045509   ;;  %vm254_vm7 = vcmask 1046534   ;;  %473 = vmatprep.subr.bf16.mxu0 %v1438_v26  ;;  %v55_v56 = vld [vmem:[%s2075_s0 + $0x14] sm:$0xf] }
  0x12   :  { %v335_v61 = vsel %vm244_vm1, %v284_v55, %v277_v54  ;;  %v305_v4 = vadd.f32 %v304_v59, %v303_v52  ;;  %v316_v7 = vrot.slane %v315_v5, 2  ;;  %v325_v9 = vrot.slane %v324_v3, 1 }
  0x13   :  { %v336_v63 = vsel %vm246_vm2, %v291_v53, %v335_v61  ;;  %vm256_vm8 = vcmask 1047559   ;;  %v1562_v27 = vmov 839922192   ;;  %v75_v29 = vlaneseq }
  0x14   :  { %v337_v6 = vsel %vm248_vm4, %v298_v60, %v336_v63  ;;  %v317_v11 = vadd.f32 %v316_v7, %v315_v5  ;;  %v326_v13 = vadd.f32 %v325_v9, %v324_v3  ;;  %v73_v28 = vunpack.c.l.s4 %v1562_v27 }
  0x15   :  { %v338_v10 = vsel %vm250_vm5, %v305_v4, %v337_v6  ;;  %v1688_v31 = vshrl.u32 %v75_v29, 7  ;;  %v57_v6 = vld [vmem:[%s2075_s0 + $0x1c] sm:$0xf] }
  0x16   :  { %v318_v12 = vrot.slane %v317_v11, 1  ;;  %v339_v14 = vsel %vm252_vm6, %v312_v8, %v338_v10  ;;  %v74_v30 = vunpack.c.0.s8 %v73_v28 }
  0x18   :  { %v319_v15 = vadd.f32 %v318_v12, %v317_v11  ;;  %v77_v32 = vsub.s32 %v74_v30, %v1688_v31 }
  0x1a   :  { %v340_v17 = vsel %vm254_vm7, %v319_v15, %v339_v14 }
  0x1b   :  { %v341_v18 = vsel %vm256_vm8, %v326_v13, %v340_v17  ;;  %v56_v13 = vld [vmem:[%s2075_s0 + $0x18] sm:$0xf] }
  0x1c   :  { %v343_v19 = vadd.f32 %v341_v18, %v261_v16 }
  0x1e   :  { %344 = vst.msk [vmem:[#allocation3] sm:$0xff] %vm48_vm0, %v343_v19 }
  0x25   :  { %v348_v20 = vld [vmem:[#allocation3] sm:$0xff] }
  0x26   :  { %v349_v21 = vmax.f32 %v348_v20, 1e-09 }
  0x28   :  { %353 = vperm.xlu0 %1428, %v349_v21  }
  0x81   :  { %v94_v33 = vpop.permute.xlu1 %93  ;;  %v70_v35 = vpop.permute.xlu0 %69 }
  0x82   :  { %v102_v37 = vrot.slane %v94_v33, %v77_v32  ;;  %v78_v38 = vrot.slane %v70_v35, %v77_v32 }
  0x84   :  { %v165_v39 = vmul.bf16 %v102_v37, %v52_v34  ;;  %v163_v40 = vmul.bf16 %v78_v38, %v50_v36 }
  0x85   :  { %v106_v41 = vpop.permute.xlu1 %105  ;;  %v82_v43 = vpop.permute.xlu0 %81 }
  0x86   :  { %v173_v45 = vunpack.c.l.bf16 %v165_v39  ;;  %v171_v46 = vunpack.c.l.bf16 %v163_v40  ;;  %v114_v47 = vrot.slane %v106_v41, %v77_v32  ;;  %v90_v48 = vrot.slane %v82_v43, %v77_v32 }
  0x88   :  { %v194_v49 = vsel %vm46_vm3, %v173_v45, 0.0  ;;  %v180_v50 = vsel %vm46_vm3, %v171_v46, 0.0  ;;  %v166_v51 = vmul.bf16 %v114_v47, %v53_v42  ;;  %v164_v52 = vmul.bf16 %v90_v48, %v51_v44 }
  0x89   :  { %v195_v53 = vrot.slane %v194_v49, 4  ;;  %v181_v54 = vrot.slane %v180_v50, 4  ;;  %v130_v55 = vpop.permute.xlu1 %129  ;;  %v118_v57 = vpop.permute.xlu0 %117 }
  0x8a   :  { %v174_v59 = vunpack.c.l.bf16 %v166_v51  ;;  %v172_v60 = vunpack.c.l.bf16 %v164_v52  ;;  %v138_v61 = vrot.slane %v130_v55, %v77_v32  ;;  %v126_v62 = vrot.slane %v118_v57, %v77_v32 }
  0x8b   :  { %v196_v63 = vadd.f32 %v195_v53, %v194_v49  ;;  %v182_v1 = vadd.f32 %v181_v54, %v180_v50 }
  0x8c   :  { %v201_v2 = vsel %vm46_vm3, %v174_v59, 0.0  ;;  %v187_v3 = vsel %vm46_vm3, %v172_v60, 0.0  ;;  %v168_v4 = vmul.bf16 %v138_v61, %v55_v56  ;;  %v167_v5 = vmul.bf16 %v126_v62, %v54_v58 }
  0x8d   :  { %v197_v7 = vrot.slane %v196_v63, 2  ;;  %v183_v8 = vrot.slane %v182_v1, 2  ;;  %v202_v9 = vrot.slane %v201_v2, 4  ;;  %v188_v10 = vrot.slane %v187_v3, 4  ;;  %v154_v11 = vpop.permute.xlu1 %153  ;;  %v142_v12 = vpop.permute.xlu0 %141 }
  0x8e   :  { %v176_v14 = vunpack.c.l.bf16 %v168_v4  ;;  %v175_v15 = vunpack.c.l.bf16 %v167_v5  ;;  %v162_v16 = vrot.slane %v154_v11, %v77_v32  ;;  %v150_v17 = vrot.slane %v142_v12, %v77_v32 }
  0x8f   :  { %v198_v18 = vadd.f32 %v197_v7, %v196_v63  ;;  %v184_v19 = vadd.f32 %v183_v8, %v182_v1  ;;  %v203_v20 = vadd.f32 %v202_v9, %v201_v2  ;;  %v189_v21 = vadd.f32 %v188_v10, %v187_v3  ;;  %v66_v8 = vld [vmem:[#allocation2] sm:$0xff] }
  0x90   :  { %v215_v22 = vsel %vm46_vm3, %v176_v14, 0.0  ;;  %v208_v23 = vsel %vm46_vm3, %v175_v15, 0.0  ;;  %v170_v24 = vmul.bf16 %v162_v16, %v57_v6  ;;  %v169_v25 = vmul.bf16 %v150_v17, %v56_v13  ;;  %v1436_v17 = vld [vmem:[%s2074_s2 + $0x8] ss:$16 sps:$4 sm:$0xff]  }
  0x91   :  { %v204_v26 = vrot.slane %v203_v20, 2  ;;  %v190_v27 = vrot.slane %v189_v21, 2  ;;  %v216_v28 = vrot.slane %v215_v22, 4  ;;  %v209_v29 = vrot.slane %v208_v23, 4 }
  0x92   :  { %v178_v30 = vunpack.c.l.bf16 %v170_v24  ;;  %v177_v33 = vunpack.c.l.bf16 %v169_v25  ;;  %v199_v34 = vrot.slane %v198_v18, 1  ;;  %v185_v35 = vrot.slane %v184_v19, 1 }
  0x93   :  { %v205_v36 = vadd.f32 %v204_v26, %v203_v20  ;;  %v191_v32 = vadd.f32 %v190_v27, %v189_v21  ;;  %v217_v37 = vadd.f32 %v216_v28, %v215_v22  ;;  %v210_v38 = vadd.f32 %v209_v29, %v208_v23  ;;  %v1439_v20 = vld [vmem:[%s2074_s2 + $0x28] ss:$16 sps:$4 sm:$0xff]   ;;  %v367_v23 = vld [vmem:[%s2076_s3] sm:$0xf] }
  0x94   :  { %v229_v39 = vsel %vm46_vm3, %v178_v30, 0.0  ;;  %v222_v40 = vsel %vm46_vm3, %v177_v33, 0.0  ;;  %v186_v47 = vadd.f32 %v185_v35, %v184_v19  ;;  %v200_v51 = vadd.f32 %v199_v34, %v198_v18  ;;  %v1441_v19 = vld [vmem:[%s2074_s2 + $0x2c] ss:$16 sps:$4 sm:$0xff]  }
  0x95   :  { %v206_v41 = vrot.slane %v205_v36, 1  ;;  %v192_v42 = vrot.slane %v191_v32, 1  ;;  %v230_v43 = vrot.slane %v229_v39, 4  ;;  %v223_v44 = vrot.slane %v222_v40, 4 }
  0x96   :  { %v218_v45 = vrot.slane %v217_v37, 2  ;;  %v211_v46 = vrot.slane %v210_v38, 2  ;;  %v1744_v21 = vsub.s32 0, %v1688_v31  ;;  %v1747_v22 = vsub.s32 1, %v1688_v31 }
  0x97   :  { %v193_v48 = vadd.f32 %v192_v42, %v191_v32  ;;  %v231_v49 = vadd.f32 %v230_v43, %v229_v39  ;;  %v224_v50 = vadd.f32 %v223_v44, %v222_v40  ;;  %v207_v54 = vadd.f32 %v206_v41, %v205_v36  ;;  %v1442_v44 = vld [vmem:[%s2077_s6 + $0x4] ss:$8 sps:$4 sm:$0xff]  }
  0x98   :  { %v219_v52 = vadd.f32 %v218_v45, %v217_v37  ;;  %v212_v53 = vadd.f32 %v211_v46, %v210_v38  ;;  %v372_v25 = vrot.slane %v367_v23, %v1744_v21  ;;  %v376_v26 = vrot.slane %v367_v23, %v1747_v22  ;;  %v1444_v45 = vld [vmem:[%s2077_s6 + $0x100] ss:$8 sps:$4 sm:$0xff]   ;;  %997 = vmatprep.subr.bf16.mxu1 %v1442_v44  ;;  %v1446_v46 = vld [vmem:[%s2077_s6 + $0x104] ss:$8 sps:$4 sm:$0xff]   ;;  %v1513_v44 = vld [vmem:[%s2077_s6 + $0xb0] ss:$8 sps:$4 sm:$0xff]  }
  0x99   :  { %v245_v55 = vsel %vm244_vm1, %v193_v48, %v186_v47  ;;  %v232_v56 = vrot.slane %v231_v49, 2  ;;  %v225_v57 = vrot.slane %v224_v50, 2  ;;  %v1755_v27 = vsub.s32 2, %v1688_v31  ;;  %v1447_v47 = vld [vmem:[%s2077_s6] ss:$8 sps:$4 sm:$0xff]  }
  0x9a   :  { %v247_v58 = vsel %vm246_vm2, %v200_v51, %v245_v55  ;;  %v220_v59 = vrot.slane %v219_v52, 1  ;;  %v213_v60 = vrot.slane %v212_v53, 1  ;;  %v1758_v29 = vsub.s32 3, %v1688_v31  ;;  %v1448_v48 = vld [vmem:[%s2077_s6 + $0x14] ss:$8 sps:$4 sm:$0xff]   ;;  %998 = vmatpush1.bf16.msra.mxu1 %v1447_v47 }
  0x9b   :  { %v249_v61 = vsel %vm248_vm4, %v207_v54, %v247_v58  ;;  %v233_v62 = vadd.f32 %v232_v56, %v231_v49  ;;  %v226_v63 = vadd.f32 %v225_v57, %v224_v50  ;;  %v380_v35 = vrot.slane %v367_v23, %v1755_v27  ;;  %v1450_v49 = vld [vmem:[%s2077_s6 + $0x110] ss:$8 sps:$4 sm:$0xff]   ;;  %v1452_v50 = vld [vmem:[%s2077_s6 + $0x114] ss:$8 sps:$4 sm:$0xff]   ;;  %999 = vmatprep.subr.bf16.mxu1 %v1448_v48  ;;  %v1458_v54 = vld [vmem:[%s2077_s6 + $0x124] ss:$8 sps:$4 sm:$0xff]  }
  0x9c   :  { %v221_v1 = vadd.f32 %v220_v59, %v219_v52  ;;  %v214_v2 = vadd.f32 %v213_v60, %v212_v53  ;;  %v384_v36 = vrot.slane %v367_v23, %v1758_v29  ;;  %v1453_v51 = vld [vmem:[%s2077_s6 + $0x10] ss:$8 sps:$4 sm:$0xff]   ;;  %v1454_v52 = vld [vmem:[%s2077_s6 + $0x24] ss:$8 sps:$4 sm:$0xff]   ;;  %v1456_v53 = vld [vmem:[%s2077_s6 + $0x120] ss:$8 sps:$4 sm:$0xff]  }
  0x9d   :  { %v234_v3 = vrot.slane %v233_v62, 1  ;;  %v227_v4 = vrot.slane %v226_v63, 1  ;;  %v1459_v55 = vld [vmem:[%s2077_s6 + $0x20] ss:$8 sps:$4 sm:$0xff]   ;;  %v1460_v56 = vld [vmem:[%s2077_s6 + $0x34] ss:$8 sps:$4 sm:$0xff]  }
  0x9e   :  { %v251_v5 = vsel %vm250_vm5, %v214_v2, %v249_v61  ;;  %1000 = vmatpush1.bf16.msra.mxu1 %v1453_v51  ;;  %v1464_v57 = vld [vmem:[%s2077_s6 + $0x134] ss:$8 sps:$4 sm:$0xff]   ;;  %v1462_v58 = vld [vmem:[%s2077_s6 + $0x130] ss:$8 sps:$4 sm:$0xff]   ;;  %v1466_v60 = vld [vmem:[%s2077_s6 + $0x44] ss:$8 sps:$4 sm:$0xff]  }
  0x9f   :  { %v235_v6 = vadd.f32 %v234_v3, %v233_v62  ;;  %v228_v7 = vadd.f32 %v227_v4, %v226_v63  ;;  %v253_v9 = vsel %vm252_vm6, %v221_v1, %v251_v5  ;;  %1001 = vmatprep.subr.bf16.mxu1 %v1454_v52  ;;  %v1465_v59 = vld [vmem:[%s2077_s6 + $0x30] ss:$8 sps:$4 sm:$0xff]   ;;  %v1470_v61 = vld [vmem:[%s2077_s6 + $0x144] ss:$8 sps:$4 sm:$0xff]   ;;  %v1468_v62 = vld [vmem:[%s2077_s6 + $0x140] ss:$8 sps:$4 sm:$0xff]  }
  0xa0   :  { %v1471_v63 = vld [vmem:[%s2077_s6 + $0x40] ss:$8 sps:$4 sm:$0xff]   ;;  %v1472_v1 = vld [vmem:[%s2077_s6 + $0x54] ss:$8 sps:$4 sm:$0xff]   ;;  %v1474_v3 = vld [vmem:[%s2077_s6 + $0x150] ss:$8 sps:$4 sm:$0xff]  }
  0xa1   :  { %v255_v10 = vsel %vm254_vm7, %v228_v7, %v253_v9  ;;  %v1476_v2 = vld [vmem:[%s2077_s6 + $0x154] ss:$8 sps:$4 sm:$0xff]   ;;  %v1477_v4 = vld [vmem:[%s2077_s6 + $0x50] ss:$8 sps:$4 sm:$0xff]   ;;  %v1478_v5 = vld [vmem:[%s2077_s6 + $0x64] ss:$8 sps:$4 sm:$0xff]  }
  0xa2   :  { %v257_v11 = vsel %vm256_vm8, %v235_v6, %v255_v10  ;;  %1002 = vmatpush1.bf16.msra.mxu1 %v1459_v55  ;;  %v1482_v6 = vld [vmem:[%s2077_s6 + $0x164] ss:$8 sps:$4 sm:$0xff]   ;;  %v1480_v7 = vld [vmem:[%s2077_s6 + $0x160] ss:$8 sps:$4 sm:$0xff]   ;;  %v1484_v9 = vld [vmem:[%s2077_s6 + $0x74] ss:$8 sps:$4 sm:$0xff]  }
  0xa3   :  { %v259_v12 = vadd.f32 %v257_v11, %v66_v8  ;;  %1003 = vmatprep.subr.bf16.mxu1 %v1460_v56  ;;  %v1483_v8 = vld [vmem:[%s2077_s6 + $0x60] ss:$8 sps:$4 sm:$0xff]   ;;  %v1488_v10 = vld [vmem:[%s2077_s6 + $0x174] ss:$8 sps:$4 sm:$0xff]   ;;  %v1489_v11 = vld [vmem:[%s2077_s6 + $0x70] ss:$8 sps:$4 sm:$0xff]  }
  0xa4   :  { %v1516_v47 = vld [vmem:[%s2077_s6 + $0x1c0] ss:$8 sps:$4 sm:$0xff]   ;;  %v1522_v51 = vld [vmem:[%s2077_s6 + $0x1d0] ss:$8 sps:$4 sm:$0xff]  }
  0xa5   :  { %260 = vst.msk [vmem:[#allocation2] sm:$0xff] %vm46_vm3, %v259_v12  ;;  %v1486_v12 = vld [vmem:[%s2077_s6 + $0x170] ss:$8 sps:$4 sm:$0xff]   ;;  %v1519_v48 = vld [vmem:[%s2077_s6 + $0xc0] ss:$8 sps:$4 sm:$0xff]  }
  0xa6   :  { %1004 = vmatpush1.bf16.msra.mxu1 %v1465_v59  ;;  %v1525_v52 = vld [vmem:[%s2077_s6 + $0xd0] ss:$8 sps:$4 sm:$0xff]   ;;  %v1528_v55 = vld [vmem:[%s2077_s6 + $0x1e0] ss:$8 sps:$4 sm:$0xff]  }
  0xa7   :  { %v354_v13 = vpop.permute.xlu0 %353  ;;  %1005 = vmatprep.subr.bf16.mxu1 %v1466_v60  ;;  %v1531_v56 = vld [vmem:[%s2077_s6 + $0xe0] ss:$8 sps:$4 sm:$0xff]   ;;  %v1534_v59 = vld [vmem:[%s2077_s6 + $0x1f0] ss:$8 sps:$4 sm:$0xff]  }
  0xa8   :  { %1554 = vrcp.f32 %v354_v13  ;;  %v1490_v13 = vld [vmem:[%s2077_s6 + $0x84] ss:$8 sps:$4 sm:$0xff]   ;;  %v1537_v60 = vld [vmem:[%s2077_s6 + $0xf0] ss:$8 sps:$4 sm:$0xff]  }
  0xaa   :  { %1006 = vmatpush1.bf16.msra.mxu1 %v1471_v63 }
  0xab   :  { %1007 = vmatprep.subr.bf16.mxu1 %v1472_v1  ;;  %v514_v1 = vld [vmem:[%s2078_s4] sm:$0xf] }
  0xac   :  { %v350_v15 = vld [vmem:[#allocation2] sm:$0xff] }
  0xae   :  { %1008 = vmatpush1.bf16.msra.mxu1 %v1477_v4  ;;  %v559_v4 = vrot.slane %v514_v1, %v1758_v29 }
  0xaf   :  { %1009 = vmatprep.subr.bf16.mxu1 %v1478_v5  ;;  %v547_v5 = vrot.slane %v514_v1, %v1744_v21 }
  0xb2   :  { %v1555_v14 = vpop.eup %1554  ;;  %1010 = vmatpush1.bf16.msra.mxu1 %v1483_v8 }
  0xb3   :  { %v357_v16 = vmul.f32 %v1555_v14, %v350_v15  ;;  %v1494_v14 = vld [vmem:[%s2077_s6 + $0x184] ss:$8 sps:$4 sm:$0xff]   ;;  %1011 = vmatprep.subr.bf16.mxu1 %v1484_v9  ;;  %v1495_v15 = vld [vmem:[%s2077_s6 + $0x80] ss:$8 sps:$4 sm:$0xff]  }
  0xb5   :  { %v358_v18 = vpack.c.bf16 %v357_v16, %v357_v16  ;;  %v1492_v16 = vld [vmem:[%s2077_s6 + $0x180] ss:$8 sps:$4 sm:$0xff]  }
  0xb6   :  { %1012 = vmatpush1.bf16.msra.mxu1 %v1489_v11 }
  0xb7   :  { %1316 = vmatmul.mubr.msk.bf16.vlgmr.msra.gmra.mrb[0].mxu0 %vm46_vm3, %v358_v18  ;;  %1013 = vmatprep.subr.bf16.mxu1 %v1490_v13 }
  0xb8   :  { %474 = vmatpush1.bf16.msra.mxu0 %v1436_v17  ;;  %505 = vmatprep.mubr.bf16.mxu0 %v1560_v0  ;;  %v1496_v17 = vld [vmem:[%s2077_s6 + $0x94] ss:$8 sps:$4 sm:$0xff]  }
  0xb9   :  { %475 = vmatprep.subr.bf16.mxu0 %v1441_v19  ;;  %v1501_v19 = vld [vmem:[%s2077_s6 + $0x90] ss:$8 sps:$4 sm:$0xff]  }
  0xba   :  { %1014 = vmatpush1.bf16.msra.mxu1 %v1495_v15 }
  0xbb   :  { %1015 = vmatprep.subr.bf16.mxu1 %v1496_v17 }
  0xbc   :  { %476 = vmatpush1.bf16.msra.mxu0 %v1439_v20  ;;  %v1498_v20 = vld [vmem:[%s2077_s6 + $0x190] ss:$8 sps:$4 sm:$0xff]  }
  0xbd   :  { %1038 = vmatprep.subr.bf16.mxu0 %v1446_v46  ;;  %v1518_v46 = vld [vmem:[%s2077_s6 + $0x1c4] ss:$8 sps:$4 sm:$0xff]  }
  0xbe   :  { %1016 = vmatpush1.bf16.msra.mxu1 %v1501_v19 }
  0xbf   :  { %1317 = vmatmul.mubr.msk.bf16.vlgmr.msra.gmra.mrb[4].mxu0 %vm46_vm3, %v358_v18  ;;  %v1500_v18 = vld [vmem:[%s2077_s6 + $0x194] ss:$8 sps:$4 sm:$0xff]  }
  0xc0   :  { %1039 = vmatpush1.bf16.msra.mxu0 %v1444_v45  ;;  %v1514_v45 = vld [vmem:[%s2077_s6 + $0xc4] ss:$8 sps:$4 sm:$0xff]  }
  0xc1   :  { %1040 = vmatprep.subr.bf16.mxu0 %v1452_v50  ;;  %v1524_v50 = vld [vmem:[%s2077_s6 + $0x1d4] ss:$8 sps:$4 sm:$0xff]  }
  0xc4   :  { %1041 = vmatpush1.bf16.msra.mxu0 %v1450_v49  ;;  %v1520_v49 = vld [vmem:[%s2077_s6 + $0xd4] ss:$8 sps:$4 sm:$0xff]  }
  0xc5   :  { %1042 = vmatprep.subr.bf16.mxu0 %v1458_v54  ;;  %v1530_v54 = vld [vmem:[%s2077_s6 + $0x1e4] ss:$8 sps:$4 sm:$0xff]  }
  0xc8   :  { %1043 = vmatpush1.bf16.msra.mxu0 %v1456_v53  ;;  %v1526_v53 = vld [vmem:[%s2077_s6 + $0xe4] ss:$8 sps:$4 sm:$0xff]  }
  0xc9   :  { %1044 = vmatprep.subr.bf16.mxu0 %v1464_v57  ;;  %v1532_v57 = vld [vmem:[%s2077_s6 + $0xf4] ss:$8 sps:$4 sm:$0xff]  }
  0xcc   :  { %1045 = vmatpush1.bf16.msra.mxu0 %v1462_v58  ;;  %v1536_v58 = vld [vmem:[%s2077_s6 + $0x1f4] ss:$8 sps:$4 sm:$0xff]  }
  0xcd   :  { %1046 = vmatprep.subr.bf16.mxu0 %v1470_v61 }
  0xd0   :  { %1047 = vmatpush1.bf16.msra.mxu0 %v1468_v62 }
  0xd1   :  { %1048 = vmatprep.subr.bf16.mxu0 %v1476_v2  ;;  %v515_v2 = vld [vmem:[%s2079_s5] sm:$0xf] }
  0xd2   :  { %v576_v8 = vrot.slane %v515_v2, %v1747_v22  ;;  %v584_v9 = vrot.slane %v515_v2, %v1758_v29  ;;  %v580_v11 = vrot.slane %v515_v2, %v1755_v27 }
  0xd4   :  { %1049 = vmatpush1.bf16.msra.mxu0 %v1474_v3  ;;  %v551_v3 = vrot.slane %v514_v1, %v1747_v22 }
  0xd5   :  { %1050 = vmatprep.subr.bf16.mxu0 %v1482_v6  ;;  %v555_v6 = vrot.slane %v514_v1, %v1755_v27  ;;  %v1546_v1 = vld [vmem:[%s2081_s10 + $0x60] sm:$0xff]  }
  0xd8   :  { %1051 = vmatpush1.bf16.msra.mxu0 %v1480_v7 }
  0xd9   :  { %1052 = vmatprep.subr.bf16.mxu0 %v1488_v10  ;;  %v572_v10 = vrot.slane %v515_v2, %v1744_v21  ;;  %v1547_v2 = vld [vmem:[%s2081_s10 + $0x20] sm:$0xff]  }
  0xdc   :  { %1053 = vmatpush1.bf16.msra.mxu0 %v1486_v12 }
  0xdd   :  { %1054 = vmatprep.subr.bf16.mxu0 %v1494_v14 }
  0xe0   :  { %1055 = vmatpush1.bf16.msra.mxu0 %v1492_v16 }
  0xe1   :  { %1056 = vmatprep.subr.bf16.mxu0 %v1500_v18 }
  0xe4   :  { %1057 = vmatpush1.bf16.msra.mxu0 %v1498_v20 }
 0x18a   :  { %v466_v24 = vpop.f32.mrb[0].mxu0 }
 0x18b   :  { %v468_v0 = vpop.f32.mrb[1].mxu0  ;;  %v1760_v33 = vadd.f32 %v466_v24, %v372_v25 }
 0x18c   :  { %v470_v28 = vpop.f32.mrb[2].mxu0  ;;  %v1762_v34 = vadd.f32 %v468_v0, %v376_v26 }
 0x18d   :  { %v471_v30 = vpop.f32.mrb[3].mxu0 }
 0x18e   :  { %v516_v37 = vadd.f32 %v1762_v34, %v1760_v33 }
 0x192   :  { %v507_v32 = vpop.f32.mrb[4].mxu0 }
 0x193   :  { %v1768_v38 = vadd.f32 %v507_v32, %v380_v35  ;;  %v509_v39 = vpop.f32.mrb[5].mxu0 }
 0x194   :  { %v1770_v40 = vadd.f32 %v509_v39, %v384_v36  ;;  %v511_v31 = vpop.f32.mrb[6].mxu0  ;;  %v1506_v39 = vld [vmem:[%s2077_s6 + $0x1a4] ss:$8 sps:$4 sm:$0xff]  }
 0x195   :  { %v517_v41 = vadd.f32 %v516_v37, %v1768_v38  ;;  %v512_v42 = vpop.f32.mrb[7].mxu0  ;;  %v1507_v31 = vld [vmem:[%s2077_s6 + $0xa0] ss:$8 sps:$4 sm:$0xff]   ;;  %1058 = vmatprep.subr.bf16.mxu0 %v1506_v39 }
 0x196   :  { %v1510_v42 = vld [vmem:[%s2077_s6 + $0x1b0] ss:$8 sps:$4 sm:$0xff]  }
 0x197   :  { %v518_v43 = vadd.f32 %v517_v41, %v1770_v40  ;;  %v1508_v41 = vld [vmem:[%s2077_s6 + $0xb4] ss:$8 sps:$4 sm:$0xff]  }
 0x199   :  { %519 = vadd.xlane.f32.xlu1 %v518_v43  ;;  %v1512_v43 = vld [vmem:[%s2077_s6 + $0x1b4] ss:$8 sps:$4 sm:$0xff]  }
 0x226   :  { %v520_v23 = vpop.xlane.xlu1 %519 }
 0x227   :  { %v522_v24 = vmul.f32 0.001953125, %v520_v23 }
 0x229   :  { %v1895_v25 = vsub.f32 %v1760_v33, %v522_v24  ;;  %v1898_v26 = vsub.f32 %v1762_v34, %v522_v24  ;;  %v1901_v0 = vsub.f32 %v1768_v38, %v522_v24  ;;  %v1904_v28 = vsub.f32 %v1770_v40, %v522_v24  ;;  %v1502_v38 = vld [vmem:[%s2077_s6 + $0xa4] ss:$8 sps:$4 sm:$0xff]   ;;  %v1504_v40 = vld [vmem:[%s2077_s6 + $0x1a0] ss:$8 sps:$4 sm:$0xff]  }
 0x22a   :  { %1017 = vmatprep.subr.bf16.mxu1 %v1502_v38  ;;  %1059 = vmatpush1.bf16.msra.mxu0 %v1504_v40 }
 0x22b   :  { %v527_v30 = vmul.f32 %v1895_v25, %v1895_v25  ;;  %v528_v35 = vmul.f32 %v1898_v26, %v1898_v26  ;;  %v529_v36 = vmul.f32 %v1901_v0, %v1901_v0  ;;  %v530_v34 = vmul.f32 %v1904_v28, %v1904_v28  ;;  %1018 = vmatpush1.bf16.msra.mxu1 %v1507_v31 }
 0x22c   :  { %1019 = vmatprep.subr.bf16.mxu1 %v1508_v41  ;;  %1060 = vmatprep.subr.bf16.mxu0 %v1512_v43 }
 0x22d   :  { %v531_v33 = vadd.f32 %v528_v35, %v527_v30 }
 0x22e   :  { %1061 = vmatpush1.bf16.msra.mxu0 %v1510_v42 }
 0x22f   :  { %v532_v32 = vadd.f32 %v531_v33, %v529_v36  ;;  %1020 = vmatpush1.bf16.msra.mxu1 %v1513_v44  ;;  %1062 = vmatprep.subr.bf16.mxu0 %v1518_v46 }
 0x230   :  { %1021 = vmatprep.subr.bf16.mxu1 %v1514_v45 }
 0x231   :  { %v533_v37 = vadd.f32 %v532_v32, %v530_v34 }
 0x232   :  { %1063 = vmatpush1.bf16.msra.mxu0 %v1516_v47 }
 0x233   :  { %534 = vadd.xlane.f32.xlu0 %v533_v37  ;;  %1022 = vmatpush1.bf16.msra.mxu1 %v1519_v48 }
 0x234   :  { %1023 = vmatprep.subr.bf16.mxu1 %v1520_v49  ;;  %1064 = vmatprep.subr.bf16.mxu0 %v1524_v50  ;;  %v1538_v49 = vld [vmem:[%s2081_s10 + $0x40] sm:$0xff]  }
 0x235   :  { %v1539_v50 = vld [vmem:[%s2081_s10] sm:$0xff]  }
 0x236   :  { %1065 = vmatpush1.bf16.msra.mxu0 %v1522_v51  ;;  %v1540_v51 = vld [vmem:[%s2081_s10 + $0x48] sm:$0xff]  }
 0x237   :  { %1024 = vmatpush1.bf16.msra.mxu1 %v1525_v52  ;;  %1066 = vmatprep.subr.bf16.mxu0 %v1530_v54  ;;  %v1541_v52 = vld [vmem:[%s2081_s10 + $0x8] sm:$0xff]  }
 0x238   :  { %1025 = vmatprep.subr.bf16.mxu1 %v1526_v53 }
 0x23a   :  { %1067 = vmatpush1.bf16.msra.mxu0 %v1528_v55 }
 0x23b   :  { %1026 = vmatpush1.bf16.msra.mxu1 %v1531_v56  ;;  %1068 = vmatprep.subr.bf16.mxu0 %v1536_v58 }
 0x23c   :  { %1027 = vmatprep.subr.bf16.mxu1 %v1532_v57 }
 0x23e   :  { %1069 = vmatpush1.bf16.msra.mxu0 %v1534_v59 }
 0x23f   :  { %1028 = vmatpush1.bf16.msra.mxu1 %v1537_v60  ;;  %v1542_v60 = vld [vmem:[%s2081_s10 + $0x50] sm:$0xff]  }
 0x240   :  { %1399 = vmatprep.subr.bf16.mxu1 %v1538_v49 }
 0x2c0   :  { %v535_v61 = vpop.xlane.xlu0 %534 }
 0x2c1   :  { %v536_v62 = vmul.f32 0.001953125, %v535_v61  ;;  %v1543_v61 = vld [vmem:[%s2081_s10 + $0x10] sm:$0xff]  }
 0x2c3   :  { %v537_v63 = vadd.f32 1e-05, %v536_v62  ;;  %v1544_v62 = vld [vmem:[%s2081_s10 + $0x58] sm:$0xff]  }
 0x2c5   :  { %1556 = vrsqrt.f32 %v537_v63  ;;  %v1545_v63 = vld [vmem:[%s2081_s10 + $0x18] sm:$0xff]  }
 0x2cf   :  { %v1557_v7 = vpop.eup %1556 }
 0x2d0   :  { %v540_v12 = vmul.f32 %v1557_v7, %v1898_v26  ;;  %v542_v13 = vmul.f32 %v1557_v7, %v1904_v28  ;;  %v539_v14 = vmul.f32 %v1557_v7, %v1895_v25  ;;  %v541_v15 = vmul.f32 %v1557_v7, %v1901_v0  ;;  %v665_v25 = vld [vmem:[%s2080_s7] sm:$0x3]  ;;  %v1552_v7 = vld [vmem:[%s2081_s10 + $0x78] sm:$0xff]  }
 0x2d1   :  { %v670_v0 = vrot.slane %v665_v25, %v1744_v21  ;;  %v674_v32 = vrot.slane %v665_v25, %v1747_v22 }
 0x2d2   :  { %v565_v16 = vmul.f32 %v551_v3, %v540_v12  ;;  %v567_v17 = vmul.f32 %v559_v4, %v542_v13  ;;  %v564_v18 = vmul.f32 %v547_v5, %v539_v14  ;;  %v566_v19 = vmul.f32 %v555_v6, %v541_v15  ;;  %v1548_v3 = vld [vmem:[%s2081_s10 + $0x68] sm:$0xff]   ;;  %v1550_v5 = vld [vmem:[%s2081_s10 + $0x70] sm:$0xff]   ;;  %v1079_v12 = vld [vmem:[%s2082_s8] sm:$0x3] }
 0x2d3   :  { %v1549_v4 = vld [vmem:[%s2081_s10 + $0x28] sm:$0xff]   ;;  %v1551_v6 = vld [vmem:[%s2081_s10 + $0x30] sm:$0xff]   ;;  %v1080_v13 = vld [vmem:[%s2083_s9] sm:$0x3]  ;;  %v1102_v14 = vrot.slane %v1079_v12, %v1744_v21  ;;  %v1106_v15 = vrot.slane %v1079_v12, %v1747_v22 }
 0x2d4   :  { %v590_v20 = vadd.f32 %v576_v8, %v565_v16  ;;  %v592_v23 = vadd.f32 %v584_v9, %v567_v17  ;;  %v589_v24 = vadd.f32 %v572_v10, %v564_v18  ;;  %v591_v29 = vadd.f32 %v580_v11, %v566_v19  ;;  %v1553_v8 = vld [vmem:[%s2081_s10 + $0x38] sm:$0xff]  }
 0x2d5   :  { %v1115_v19 = vrot.slane %v1080_v13, %v1744_v21 }
 0x2d6   :  { %v594_v30 = vmax.f32 %v590_v20, 0.0  ;;  %v596_v35 = vmax.f32 %v592_v23, 0.0  ;;  %v593_v36 = vmax.f32 %v589_v24, 0.0  ;;  %v595_v27 = vmax.f32 %v591_v29, 0.0 }
 0x2d7   :  { %v1119_v20 = vrot.slane %v1080_v13, %v1747_v22 }
 0x2d8   :  { %v598_v33 = vpack.c.bf16 %v594_v30, %v594_v30  ;;  %v600_v26 = vpack.c.bf16 %v596_v35, %v596_v35  ;;  %v597_v34 = vpack.c.bf16 %v593_v36, %v593_v36  ;;  %v599_v28 = vpack.c.bf16 %v595_v27, %v595_v27 }
 0x2da   :  { %1029 = vmatprep.mubr.bf16.mxu1 %v598_v33  ;;  %1070 = vmatprep.mubr.bf16.mxu0 %v600_v26 }
 0x2db   :  { %1030 = vmatmul.mubr.bf16.vlgmr.msra.gmra.mrb[0].mxu1 %v597_v34  ;;  %1071 = vmatmul.mubr.bf16.vlgmr.msra.gmra.mrb[8].mxu0 %v599_v28  ;;  %v1382_v34 = vld [vmem:[%s2084_s11] ss:$0 sm:$0xff] }
 0x2dc   :  { %1400 = vmatpush3.bf16.msra.mxu1 %v1539_v50 }
 0x2dd   :  { %1401 = vmatprep.subr.bf16.mxu1 %v1540_v51 }
 0x2e0   :  { %1402 = vmatpush3.bf16.msra.mxu1 %v1541_v52 }
 0x2e1   :  { %1403 = vmatprep.subr.bf16.mxu1 %v1542_v60 }
 0x2e4   :  { %1404 = vmatpush3.bf16.msra.mxu1 %v1543_v61 }
 0x2e5   :  { %1405 = vmatprep.subr.bf16.mxu1 %v1544_v62 }
 0x2e8   :  { %1406 = vmatpush3.bf16.msra.mxu1 %v1545_v63 }
 0x2e9   :  { %1407 = vmatprep.subr.bf16.mxu1 %v1546_v1 }
 0x2ec   :  { %1408 = vmatpush3.bf16.msra.mxu1 %v1547_v2 }
 0x2ed   :  { %1409 = vmatprep.subr.bf16.mxu1 %v1548_v3 }
 0x2f0   :  { %1410 = vmatpush3.bf16.msra.mxu1 %v1549_v4 }
 0x2f1   :  { %1411 = vmatprep.subr.bf16.mxu1 %v1550_v5 }
 0x2f4   :  { %1412 = vmatpush3.bf16.msra.mxu1 %v1551_v6 }
 0x2f5   :  { %1413 = vmatprep.subr.bf16.mxu1 %v1552_v7 }
 0x2f8   :  { %1414 = vmatpush3.bf16.msra.mxu1 %v1553_v8 }
 0x3ae   :  { %v1031_v37 = vpop.f32.mrb[0].mxu1  ;;  %v1072_v38 = vpop.f32.mrb[8].mxu0 }
 0x3af   :  { %v1032_v39 = vadd.f32 %v1031_v37, %v670_v0  ;;  %v1033_v40 = vpop.f32.mrb[1].mxu1  ;;  %v1074_v31 = vpop.f32.mrb[9].mxu0 }
 0x3b0   :  { %v1034_v41 = vadd.f32 %v1033_v40, %v674_v32  ;;  %v1035_v42 = vpop.f32.mrb[2].mxu1  ;;  %v1076_v43 = vpop.f32.mrb[10].mxu0 }
 0x3b1   :  { %v1073_v44 = vadd.f32 %v1072_v38, %v1032_v39  ;;  %v1036_v45 = vpop.f32.mrb[3].mxu1  ;;  %v1077_v46 = vpop.f32.mrb[11].mxu0 }
 0x3b2   :  { %v1075_v47 = vadd.f32 %v1074_v31, %v1034_v41 }
 0x3b4   :  { %v1081_v48 = vadd.f32 %v1075_v47, %v1073_v44 }
 0x3b6   :  { %1082 = vadd.xlane.f32.xlu0 %v1081_v48 }
 0x443   :  { %v1083_v53 = vpop.xlane.xlu0 %1082 }
 0x444   :  { %v1085_v54 = vmul.f32 0.00390625, %v1083_v53 }
 0x446   :  { %v1086_v55 = vsub.f32 %v1073_v44, %v1085_v54  ;;  %v1087_v56 = vsub.f32 %v1075_v47, %v1085_v54 }
 0x448   :  { %v1088_v57 = vmul.f32 %v1086_v55, %v1086_v55  ;;  %v1089_v58 = vmul.f32 %v1087_v56, %v1087_v56 }
 0x44a   :  { %v1090_v59 = vadd.f32 %v1089_v58, %v1088_v57 }
 0x44c   :  { %1091 = vadd.xlane.f32.xlu1 %v1090_v59 }
 0x4d9   :  { %v1092_v9 = vpop.xlane.xlu1 %1091 }
 0x4da   :  { %v1093_v10 = vmul.f32 0.00390625, %v1092_v9 }
 0x4dc   :  { %v1094_v11 = vadd.f32 1e-05, %v1093_v10 }
 0x4de   :  { %1558 = vrsqrt.f32 %v1094_v11 }
 0x4e8   :  { %v1559_v16 = vpop.eup %1558 }
 0x4e9   :  { %v1096_v17 = vmul.f32 %v1559_v16, %v1086_v55  ;;  %v1097_v18 = vmul.f32 %v1559_v16, %v1087_v56 }
 0x4eb   :  { %v1110_v23 = vmul.f32 %v1106_v15, %v1097_v18  ;;  %v1109_v24 = vmul.f32 %v1102_v14, %v1096_v17 }
 0x4ed   :  { %v1123_v29 = vadd.f32 %v1119_v20, %v1110_v23  ;;  %v1122_v30 = vadd.f32 %v1115_v19, %v1109_v24 }
 0x4ef   :  { %v1125_v35 = vmax.f32 %v1123_v29, 0.0  ;;  %v1124_v36 = vmax.f32 %v1122_v30, 0.0 }
 0x4f1   :  { %v1127_v27 = vpack.c.bf16 %v1125_v35, %v1125_v35  ;;  %v1126_v33 = vpack.c.bf16 %v1124_v36, %v1124_v36 }
 0x4f3   :  { %1295 = vmatprep.mubr.bf16.mxu1 %v1127_v27 }
 0x4f4   :  { %1296 = vmatmul.mubr.bf16.vlgmr.msra.gmra.mrb[4].mxu1 %v1126_v33 }
 0x5c7   :  { %v1415_v26 = vpop.f32.mrb[4].mxu1 }
 0x5c8   :  { %v1416_v28 = vpop.f32.mrb[5].mxu1 }
 0x5c9   :  { %v1417_v25 = vadd.f32 %v1416_v28, %v1415_v26  ;;  %v1418_v21 = vpop.f32.mrb[6].mxu1 }
 0x5ca   :  { %v1419_v0 = vpop.f32.mrb[7].mxu1 }
 0x5cb   :  { %v1298_v22 = vadd.f32 %v1417_v25, %v1382_v34 }
 0x5cd   :  { %1303 = vst [vmem:[%s2085_s12] sm:$0xff] %v1298_v22 }

</bundles_post_ra>
